<compile_context>
chip_gen: v7x
topology: tpu7x:2x2x1
jax: 0.10.0
libtpu: 0.0.40
codegen_flags: <defaults>
</compile_context>

<pallas_src>
import jax
import jax.numpy as jnp
from jax.experimental import pallas as pl
from jax.experimental.pallas import tpu as pltpu

LANE = 128
SUB = 8


def _round_up(v, m):
    return ((v + m - 1) // m) * m


def _make_kernel(K, tile_k):
    needs_k_mask = (K % tile_k) != 0

    def kernel(x_ref, w1_ref, b1_ref, w2_ref, b2_ref, w3_ref, b3_ref, o_ref, acc_ref):
        k = pl.program_id(1)

        @pl.when(k == 0)
        def _():
            acc_ref[...] = jnp.zeros_like(acc_ref)

        xv = x_ref[...].astype(jnp.float32)
        if needs_k_mask:
            # Zero the out-of-range tail of the last K chunk (w1_eff is zero-padded,
            # but garbage x values could be inf/NaN, so mask the x side too).
            col = jax.lax.broadcasted_iota(jnp.int32, xv.shape, 1) + k * tile_k
            xv = jnp.where(col < K, xv, 0.0)

        # Pooling is folded into w1_eff, so this single MXU matmul performs
        # AdaptiveAvgPool1d + fc1 (pre-bias), accumulated over the K chunks.
        acc_ref[...] += jnp.dot(xv, w1_ref[...], preferred_element_type=jnp.float32)

        @pl.when(k == pl.num_programs(1) - 1)
        def _():
            h = jnp.maximum(acc_ref[...] + b1_ref[...], 0.0)
            h = jnp.maximum(
                jnp.dot(h, w2_ref[...], preferred_element_type=jnp.float32) + b2_ref[...], 0.0
            )
            out = jnp.dot(h, w3_ref[...], preferred_element_type=jnp.float32) + b3_ref[...]
            o_ref[...] = out.astype(o_ref.dtype)

    return kernel


def quantity_mlp(x, w1, b1, w2, b2, w3, b3):
    """x: (B, C, L). Weights are (in, out); biases are (1, out)."""
    B, C, L = x.shape
    hidden = w1.shape[1]
    out_features = w3.shape[1]
    K = C * L

    # Flatten x to a lane-dense 2-D slab (free for row-major HBM).
    x_flat = x.reshape(B, K)
    itemsize = x_flat.dtype.itemsize

    # ---- Lane-dense output: pad out_features up to a multiple of 128 ------------
    out_pad = _round_up(out_features, LANE)
    if out_pad != out_features:
        w3 = jnp.pad(w3, ((0, 0), (0, out_pad - out_features)))
        b3 = jnp.pad(b3, ((0, 0), (0, out_pad - out_features)))

    # ---- Fold the average pool into fc1: w1_eff[c*L + l, h] = w1[c, h] / L -------
    w1_eff = jnp.repeat(w1, L, axis=0) / jnp.float32(L)

    # ---- VMEM capacity / budget (padded-footprint math) -------------------------
    try:
        vmem_cap = int(pltpu.get_tpu_info().vmem_capacity_bytes)
    except Exception:
        vmem_cap = 64 * 1024 * 1024  # safe on v5e/v6e/v7x
    vmem_budget = int(vmem_cap * 0.65)

    hid_pad = _round_up(hidden, LANE)

    # K chunk: whole K when modest, else a lane-aligned chunk small enough that the
    # double-buffered w1_eff blocks stay a fraction of the budget.
    k_budget = max(2 * LANE * hid_pad * 4, int(vmem_budget * 0.25))
    tile_k_cap = max(LANE, (k_budget // (2 * hid_pad * 4)) // LANE * LANE)
    tile_k = K if K <= tile_k_cap else tile_k_cap
    nk = pl.cdiv(K, tile_k)
    K_pad = nk * tile_k
    if K_pad != K:
        w1_eff = jnp.pad(w1_eff, ((0, K_pad - K), (0, 0)))

    # Per-row VMEM bytes with layout padding: x double-buffer + out double-buffer + acc.
    row_x = _round_up(tile_k, LANE) * itemsize
    per_row = 2 * row_x + 2 * out_pad * 4 + hid_pad * 4
    # Weight / bias footprint (w1_eff chunks are double-buffered; rest resident).
    w_bytes = (
        2 * _round_up(tile_k, SUB) * hid_pad * 4
        + _round_up(hidden, SUB) * hid_pad * 4
        + _round_up(hidden, SUB) * out_pad * 4
        + SUB * (2 * hid_pad + out_pad) * 4
    )

    rows_budget = max(SUB, ((vmem_budget - w_bytes) // per_row) // SUB * SUB)
    # Keep at least 2 batch grid steps so both v7x TensorCores get work.
    two_steps = max(SUB, _round_up(pl.cdiv(B, 2), SUB))
    tile_b = int(min(rows_budget, 2048, two_steps, _round_up(B, SUB)))
    tile_b = max(tile_b, SUB)

    nb = pl.cdiv(B, tile_b)  # no batch padding: edge-block garbage rows never reach HBM

    needed = w_bytes + tile_b * per_row
    vmem_limit = int(min(max(needed + (8 << 20), 32 << 20), int(vmem_cap * 0.9)))

    kernel = _make_kernel(K, tile_k)
    resident = lambda b, k: (0, 0)

    out = pl.pallas_call(
        kernel,
        out_shape=jax.ShapeDtypeStruct((B, out_pad), jnp.float32),
        grid=(nb, nk),
        in_specs=[
            pl.BlockSpec((tile_b, tile_k), lambda b, k: (b, k)),   # streamed x
            pl.BlockSpec((tile_k, hidden), lambda b, k: (k, 0)),   # w1_eff (pool + fc1)
            pl.BlockSpec((1, hidden), resident),                   # b1
            pl.BlockSpec((hidden, hidden), resident),              # w2
            pl.BlockSpec((1, hidden), resident),                   # b2
            pl.BlockSpec((hidden, out_pad), resident),             # w3 (padded)
            pl.BlockSpec((1, out_pad), resident),                  # b3 (padded)
        ],
        out_specs=pl.BlockSpec((tile_b, out_pad), lambda b, k: (b, 0)),
        scratch_shapes=[pltpu.VMEM((tile_b, hidden), jnp.float32)],
        compiler_params=pltpu.CompilerParams(
            dimension_semantics=("parallel", "arbitrary"),
            vmem_limit_bytes=vmem_limit,
        ),
    )(x_flat, w1_eff, b1, w2, b2, w3, b3)

    # Drop the output-feature padding (out_shape already has exactly B rows).
    return out[:, :out_features]


def init_params(key, input_size, hidden_size, output_size):
    """Deterministic init mirroring nn.Linear shapes (stored transposed: (in, out))."""
    ks = jax.random.split(key, 6)

    def linear(kw, kb, fan_in, fan_out):
        bound = 1.0 / jnp.sqrt(jnp.float32(fan_in))
        w = jax.random.uniform(kw, (fan_in, fan_out), jnp.float32, -bound, bound)
        b = jax.random.uniform(kb, (1, fan_out), jnp.float32, -bound, bound)
        return w, b

    w1, b1 = linear(ks[0], ks[1], input_size, hidden_size)
    w2, b2 = linear(ks[2], ks[3], hidden_size, hidden_size)
    w3, b3 = linear(ks[4], ks[5], hidden_size, output_size)
    return w1, b1, w2, b2, w3, b3


def reference(x, w1, b1, w2, b2, w3, b3):
    pooled = jnp.mean(x, axis=-1)
    h = jnp.maximum(pooled @ w1 + b1, 0.0)
    h = jnp.maximum(h @ w2 + b2, 0.0)
    return h @ w3 + b3


if __name__ == "__main__":
    B, C, L = 2, 4, 16          # batch, channels (= input_size), sequence length
    hidden_size, output_size = 32, 8

    key = jax.random.PRNGKey(0)
    kx, kp = jax.random.split(key)
    x = jax.random.normal(kx, (B, C, L), jnp.float32)
    params = init_params(kp, C, hidden_size, output_size)

    out = quantity_mlp(x, *params)
    out = jax.block_until_ready(out)

    ref = reference(x, *params)
    assert out.shape == (B, output_size)
    assert jnp.allclose(out, ref, atol=1e-4, rtol=1e-4), "Pallas kernel mismatch vs reference"

    print("KERNEL_OK")
</pallas_src>

<mosaic_0001>
module attributes {stable_mosaic.version = 11 : i64} {
  func.func @kernel(%arg0: i32, %arg1: i32, %arg2: memref<8x64xf32, #tpu.memory_space<vmem>>, %arg3: memref<64x32xf32, #tpu.memory_space<vmem>>, %arg4: memref<1x32xf32, #tpu.memory_space<vmem>>, %arg5: memref<32x32xf32, #tpu.memory_space<vmem>>, %arg6: memref<1x32xf32, #tpu.memory_space<vmem>>, %arg7: memref<32x128xf32, #tpu.memory_space<vmem>>, %arg8: memref<1x128xf32, #tpu.memory_space<vmem>>, %arg9: memref<8x128xf32, #tpu.memory_space<vmem>>, %arg10: memref<8x32xf32, #tpu.memory_space<vmem>>) attributes {dimension_semantics = [#tpu.dimension_semantics<parallel>, #tpu.dimension_semantics<arbitrary>], iteration_bounds = array<i64: 1, 1>, scalar_prefetch = 0 : i64, scratch_operands = 1 : i64, tpu.core_type = #tpu.core_type<tc>, window_params = [{transform_indices = @transform_0, window_bounds = array<i64: 8, 64>}, {transform_indices = @transform_1, window_bounds = array<i64: 64, 32>}, {pipeline_mode = #tpu.pipeline_mode<synchronous>, transform_indices = @transform_2, window_bounds = array<i64: 1, 32>}, {pipeline_mode = #tpu.pipeline_mode<synchronous>, transform_indices = @transform_3, window_bounds = array<i64: 32, 32>}, {pipeline_mode = #tpu.pipeline_mode<synchronous>, transform_indices = @transform_4, window_bounds = array<i64: 1, 32>}, {pipeline_mode = #tpu.pipeline_mode<synchronous>, transform_indices = @transform_5, window_bounds = array<i64: 32, 128>}, {pipeline_mode = #tpu.pipeline_mode<synchronous>, transform_indices = @transform_6, window_bounds = array<i64: 1, 128>}, {transform_indices = @transform_7, window_bounds = array<i64: 8, 128>}]} {
    %c0_i32 = arith.constant 0 : i32
    %0 = arith.cmpi eq, %arg1, %c0_i32 : i32
    %1 = arith.extui %0 : i1 to i32
    %c0_i32_0 = arith.constant 0 : i32
    %2 = arith.cmpi ne, %1, %c0_i32_0 : i32
    scf.if %2 {
      %cst_10 = arith.constant 0.000000e+00 : f32
      %12 = vector.broadcast %cst_10 : f32 to vector<8x32xf32>
      %c0_11 = arith.constant 0 : index
      %c0_12 = arith.constant 0 : index
      %13 = vector.load %arg10[%c0_11, %c0_12] : memref<8x32xf32, #tpu.memory_space<vmem>>, vector<8x32xf32>
      tpu.vector_store %arg10[%c0_11, %c0_12], %12 {strides = array<i32>} : memref<8x32xf32, #tpu.memory_space<vmem>>, vector<8x32xf32>,
    } else {
    }
    %c0 = arith.constant 0 : index
    %c0_1 = arith.constant 0 : index
    %3 = vector.load %arg2[%c0, %c0_1] : memref<8x64xf32, #tpu.memory_space<vmem>>, vector<8x64xf32>
    %c0_2 = arith.constant 0 : index
    %c0_3 = arith.constant 0 : index
    %4 = vector.load %arg10[%c0_2, %c0_3] : memref<8x32xf32, #tpu.memory_space<vmem>>, vector<8x32xf32>
    %c0_4 = arith.constant 0 : index
    %c0_5 = arith.constant 0 : index
    %5 = vector.load %arg3[%c0_4, %c0_5] : memref<64x32xf32, #tpu.memory_space<vmem>>, vector<64x32xf32>
    %cst = arith.constant dense<0.000000e+00> : vector<8x32xf32>
    %6 = tpu.matmul %3, %5, %cst {dimension_numbers = #tpu.dot_dimension_numbers<[1], [0], [0], [1], [0, 0, 1, 1], [], []>} : vector<8x64xf32>, vector<64x32xf32>, vector<8x32xf32> -> vector<8x32xf32>
    %7 = arith.addf %4, %6 : vector<8x32xf32>
    %c0_6 = arith.constant 0 : index
    %c0_7 = arith.constant 0 : index
    %8 = vector.load %arg10[%c0_6, %c0_7] : memref<8x32xf32, #tpu.memory_space<vmem>>, vector<8x32xf32>
    tpu.vector_store %arg10[%c0_6, %c0_7], %7 {strides = array<i32>} : memref<8x32xf32, #tpu.memory_space<vmem>>, vector<8x32xf32>,
    %c0_i32_8 = arith.constant 0 : i32
    %9 = arith.cmpi eq, %arg1, %c0_i32_8 : i32
    %10 = arith.extui %9 : i1 to i32
    %c0_i32_9 = arith.constant 0 : i32
    %11 = arith.cmpi ne, %10, %c0_i32_9 : i32
    scf.if %11 {
      %c0_10 = arith.constant 0 : index
      %c0_11 = arith.constant 0 : index
      %12 = vector.load %arg10[%c0_10, %c0_11] : memref<8x32xf32, #tpu.memory_space<vmem>>, vector<8x32xf32>
      %c0_12 = arith.constant 0 : index
      %c0_13 = arith.constant 0 : index
      %13 = vector.load %arg4[%c0_12, %c0_13] : memref<1x32xf32, #tpu.memory_space<vmem>>, vector<1x32xf32>
      %14 = vector.broadcast %13 : vector<1x32xf32> to vector<8x32xf32>
      %15 = arith.addf %12, %14 : vector<8x32xf32>
      %cst_14 = arith.constant 0.000000e+00 : f32
      %16 = vector.broadcast %cst_14 : f32 to vector<8x32xf32>
      %17 = arith.maximumf %15, %16 : vector<8x32xf32>
      %c0_15 = arith.constant 0 : index
      %c0_16 = arith.constant 0 : index
      %18 = vector.load %arg5[%c0_15, %c0_16] : memref<32x32xf32, #tpu.memory_space<vmem>>, vector<32x32xf32>
      %cst_17 = arith.constant dense<0.000000e+00> : vector<8x32xf32>
      %19 = tpu.matmul %17, %18, %cst_17 {dimension_numbers = #tpu.dot_dimension_numbers<[1], [0], [0], [1], [0, 0, 1, 1], [], []>} : vector<8x32xf32>, vector<32x32xf32>, vector<8x32xf32> -> vector<8x32xf32>
      %c0_18 = arith.constant 0 : index
      %c0_19 = arith.constant 0 : index
      %20 = vector.load %arg6[%c0_18, %c0_19] : memref<1x32xf32, #tpu.memory_space<vmem>>, vector<1x32xf32>
      %21 = vector.broadcast %20 : vector<1x32xf32> to vector<8x32xf32>
      %22 = arith.addf %19, %21 : vector<8x32xf32>
      %cst_20 = arith.constant 0.000000e+00 : f32
      %23 = vector.broadcast %cst_20 : f32 to vector<8x32xf32>
      %24 = arith.maximumf %22, %23 : vector<8x32xf32>
      %c0_21 = arith.constant 0 : index
      %c0_22 = arith.constant 0 : index
      %25 = vector.load %arg7[%c0_21, %c0_22] : memref<32x128xf32, #tpu.memory_space<vmem>>, vector<32x128xf32>
      %cst_23 = arith.constant dense<0.000000e+00> : vector<8x128xf32>
      %26 = tpu.matmul %24, %25, %cst_23 {dimension_numbers = #tpu.dot_dimension_numbers<[1], [0], [0], [1], [0, 0, 1, 1], [], []>} : vector<8x32xf32>, vector<32x128xf32>, vector<8x128xf32> -> vector<8x128xf32>
      %c0_24 = arith.constant 0 : index
      %c0_25 = arith.constant 0 : index
      %27 = vector.load %arg8[%c0_24, %c0_25] : memref<1x128xf32, #tpu.memory_space<vmem>>, vector<1x128xf32>
      %28 = vector.broadcast %27 : vector<1x128xf32> to vector<8x128xf32>
      %29 = arith.addf %26, %28 : vector<8x128xf32>
      %c0_26 = arith.constant 0 : index
      %c0_27 = arith.constant 0 : index
      %30 = vector.load %arg9[%c0_26, %c0_27] : memref<8x128xf32, #tpu.memory_space<vmem>>, vector<8x128xf32>
      tpu.vector_store %arg9[%c0_26, %c0_27], %29 {strides = array<i32>} : memref<8x128xf32, #tpu.memory_space<vmem>>, vector<8x128xf32>,
    } else {
    }
    return
  }
  func.func @transform_0(%arg0: i32, %arg1: i32) -> (i32, i32) {
    %c0_i32 = arith.constant 0 : i32
    return %arg0, %arg1 : i32, i32
  }
  func.func @transform_1(%arg0: i32, %arg1: i32) -> (i32, i32) {
    %c0_i32 = arith.constant 0 : i32
    %c0_i32_0 = arith.constant 0 : i32
    return %arg1, %c0_i32 : i32, i32
  }
  func.func @transform_2(%arg0: i32, %arg1: i32) -> (i32, i32) {
    %c0_i32 = arith.constant 0 : i32
    %c0_i32_0 = arith.constant 0 : i32
    %c0_i32_1 = arith.constant 0 : i32
    return %c0_i32, %c0_i32_0 : i32, i32
  }
  func.func @transform_3(%arg0: i32, %arg1: i32) -> (i32, i32) {
    %c0_i32 = arith.constant 0 : i32
    %c0_i32_0 = arith.constant 0 : i32
    %c0_i32_1 = arith.constant 0 : i32
    return %c0_i32, %c0_i32_0 : i32, i32
  }
  func.func @transform_4(%arg0: i32, %arg1: i32) -> (i32, i32) {
    %c0_i32 = arith.constant 0 : i32
    %c0_i32_0 = arith.constant 0 : i32
    %c0_i32_1 = arith.constant 0 : i32
    return %c0_i32, %c0_i32_0 : i32, i32
  }
  func.func @transform_5(%arg0: i32, %arg1: i32) -> (i32, i32) {
    %c0_i32 = arith.constant 0 : i32
    %c0_i32_0 = arith.constant 0 : i32
    %c0_i32_1 = arith.constant 0 : i32
    return %c0_i32, %c0_i32_0 : i32, i32
  }
  func.func @transform_6(%arg0: i32, %arg1: i32) -> (i32, i32) {
    %c0_i32 = arith.constant 0 : i32
    %c0_i32_0 = arith.constant 0 : i32
    %c0_i32_1 = arith.constant 0 : i32
    return %c0_i32, %c0_i32_0 : i32, i32
  }
  func.func @transform_7(%arg0: i32, %arg1: i32) -> (i32, i32) {
    %c0_i32 = arith.constant 0 : i32
    %c0_i32_0 = arith.constant 0 : i32
    return %arg0, %c0_i32 : i32, i32
  }
}

</mosaic_0001>

<bundles_post_ra>
// kernel: tpu_custom_call.1
= control target key start
LH: loop header
LB: loop body
LE: loop exit
PB: predicated region body
PF: predicated region fallthrough
CT: control target
= control target key end

     0   :  { %12 = vsyncpa [#allocation4], 0  ;;  %v439_v2 = vmov 0.0|0.0   ;;  %vm31_vm0 = vcmask 261120   ;;  %vm440_vm1 = vmmov 0   ;;  %v441_v6 = vmov 0.0   ;;  %s564_s0 = inlined_call_operand.vmem [shape: f32[2,64], index: 0, kind: input, shape index: {}]   ;;  %s565_s1 = inlined_call_operand.vmem [shape: f32[64,32], index: 1, kind: input, shape index: {}]   ;;  %s566_s2 = inlined_call_operand.vmem [shape: f32[1,32], index: 2, kind: input, shape index: {}]   ;;  %s567_s3 = inlined_call_operand.vmem [shape: f32[32,32], index: 3, kind: input, shape index: {}]   ;;  %s568_s4 = inlined_call_operand.vmem [shape: f32[1,32], index: 4, kind: input, shape index: {}]   ;;  %s569_s5 = inlined_call_operand.vmem [shape: f32[32,128], index: 5, kind: input, shape index: {}]   ;;  %s570_s6 = inlined_call_operand.vmem [shape: f32[1,128], index: 6, kind: input, shape index: {}]   ;;  %s571_s7 = inlined_call_operand.hbm [shape: f32[2,128], index: 7, kind: output, shape index: {}]  }
   0x1   :  { %v35_v0 = vld [vmem:[%s565_s1] sm:$0xff]  ;;  %v36_v1 = vld [vmem:[%s565_s1 + $0x8] sm:$0xff]  ;;  %385 = vmatprep.subr.bf16.mxu0 %v439_v2  ;;  %v37_v4 = vld [vmem:[%s565_s1 + $0x10] sm:$0xff]  ;;  %397 = vmatprep.subr.bf16.mxu1 %v439_v2  ;;  %32 = vst.msk [vmem:[#allocation2] sm:$0xff] %vm31_vm0, %v441_v6  ;;  %vm43_vm2 = vcmask 523264  }
   0x2   :  { %v386_v3 = vpack.c.bf16 %v36_v1, %v35_v0  ;;  %v38_v5 = vld [vmem:[%s565_s1 + $0x18] sm:$0xff]  ;;  %360 = vmatprep.mubr.msk.f32.mxu0 %vm440_vm1, %v441_v6  ;;  %371 = vmatprep.mubr.msk.f32.mxu1 %vm440_vm1, %v441_v6  ;;  %v39_v8 = vld [vmem:[%s565_s1 + $0x20] sm:$0xff]  ;;  %v40_v9 = vld [vmem:[%s565_s1 + $0x28] sm:$0xff] }
   0x3   :  { %v389_v7 = vpack.c.bf16 %v38_v5, %v37_v4  ;;  %v392_v10 = vpack.c.bf16 %v40_v9, %v39_v8  ;;  %v41_v11 = vld [vmem:[%s565_s1 + $0x30] sm:$0xff]  ;;  %v42_v12 = vld [vmem:[%s565_s1 + $0x38] sm:$0xff]  ;;  %v33_v14 = vld [vmem:[%s564_s0] sm:$0xff] }
   0x4   :  { %387 = vmatpush3.bf16.msra.mxu0 %v386_v3  ;;  %v395_v13 = vpack.c.bf16 %v42_v12, %v41_v11  ;;  %v133_v15 = vld [vmem:[%s567_s3] sm:$0xff]  ;;  %v134_v16 = vld [vmem:[%s567_s3 + $0x8] sm:$0xff]  ;;  %v135_v17 = vld [vmem:[%s567_s3 + $0x10] sm:$0xff] }
   0x5   :  { %388 = vmatprep.subr.bf16.mxu0 %v439_v2  ;;  %v398_v18 = vpack.c.bf16 %v134_v16, %v133_v15  ;;  %v136_v19 = vld [vmem:[%s567_s3 + $0x18] sm:$0xff]  ;;  %v320_v25 = vld [vmem:[%s566_s2] ss:$0 sm:$0xff]  ;;  %v219_v27 = vld [vmem:[%s569_s5 + $0x8] sm:$0xff] }
   0x6   :  { %v401_v20 = vpack.c.bf16 %v136_v19, %v135_v17  ;;  %v218_v26 = vld [vmem:[%s569_s5] sm:$0xff]  ;;  %v220_v32 = vld [vmem:[%s569_s5 + $0x10] sm:$0xff]  ;;  %v221_v33 = vld [vmem:[%s569_s5 + $0x18] sm:$0xff] }
   0x7   :  { %399 = vmatpush3.bf16.msra.mxu1 %v398_v18  ;;  %v404_v30 = vpack.c.bf16 %v219_v27, %v218_v26  ;;  %v407_v34 = vpack.c.bf16 %v221_v33, %v220_v32  ;;  %v321_v35 = vld [vmem:[%s568_s4] ss:$0 sm:$0xff] }
   0x8   :  { %390 = vmatpush3.bf16.msra.mxu0 %v389_v7  ;;  %400 = vmatprep.subr.bf16.mxu1 %v439_v2  ;;  %v34_v21 = vld [vmem:[#allocation2] sm:$0xff] }
   0x9   :  { %391 = vmatprep.subr.bf16.mxu0 %v439_v2  ;;  %v323_v40 = vld [vmem:[%s570_s6] ss:$0 sm:$0xff] }
   0xb   :  { %402 = vmatpush3.bf16.msra.mxu1 %v401_v20 }
   0xc   :  { %393 = vmatpush3.bf16.msra.mxu0 %v392_v10  ;;  %403 = vmatprep.subr.bf16.mxu1 %v439_v2 }
   0xd   :  { %394 = vmatprep.subr.bf16.mxu0 %v439_v2 }
  0x10   :  { %396 = vmatpush3.bf16.msra.mxu0 %v395_v13 }
  0x13   :  { %361 = vmatmul.mubr.msk.f32.vlgmr.msra.gmra.mrb[0].mxu0 %vm43_vm2, %v33_v14 }
  0xe6   :  { %v113_v22 = vpop.f32.mrb[0].mxu0 }
  0xe7   :  { %v117_v23 = vadd.f32 %v113_v22, %v34_v21  ;;  %v362_v24 = vpop.f32.mrb[1].mxu0 }
  0xe9   :  { %119 = vst.msk [vmem:[#allocation2] sm:$0xff] %vm31_vm0, %v117_v23 }
  0xf0   :  { %v123_v28 = vld [vmem:[#allocation2] sm:$0xff] }
  0xf1   :  { %v131_v29 = vadd.f32 %v320_v25, %v123_v28 }
  0xf3   :  { %v132_v31 = vmax.f32 %v131_v29, 0.0 }
  0xf5   :  { %372 = vmatmul.mubr.msk.f32.vlgmr.msra.gmra.mrb[0].mxu1 %vm31_vm0, %v132_v31 }
  0xf6   :  { %405 = vmatpush3.bf16.msra.mxu1 %v404_v30  ;;  %382 = vmatprep.mubr.msk.f32.mxu1 %vm440_vm1, %v441_v6 }
  0xf7   :  { %406 = vmatprep.subr.bf16.mxu1 %v439_v2 }
  0xfa   :  { %408 = vmatpush3.bf16.msra.mxu1 %v407_v34 }
 0x1c8   :  { %v213_v36 = vpop.f32.mrb[0].mxu1 }
 0x1c9   :  { %v214_v37 = vadd.f32 %v321_v35, %v213_v36  ;;  %v373_v38 = vpop.f32.mrb[1].mxu1 }
 0x1cb   :  { %v217_v39 = vmax.f32 %v214_v37, 0.0 }
 0x1cd   :  { %383 = vmatmul.mubr.msk.f32.vlgmr.msra.gmra.mrb[2].mxu1 %vm31_vm0, %v217_v39 }
 0x2a0   :  { %v298_v41 = vpop.f32.mrb[2].mxu1 }
 0x2a1   :  { %v299_v42 = vadd.f32 %v323_v40, %v298_v41  ;;  %v384_v43 = vpop.f32.mrb[3].mxu1 }
 0x2a3   :  { %302 = vst [vmem:[#allocation3] sm:$0xff] %v299_v42 }
 0x2a4   :  { %307 = vsyncadd [#allocation4], 96  ;;  %s442_s5 = smov [#allocation3]  }
 0x2a5   :  { %s308_s14 = sshll.u32 %s442_s5, 4  ;;  %s309_s14 = int_to_ptr.vmem [resolvable:$true] %s308_s14 }
 0x2a6   :  { %s415_s15 = scalar_lea.vmem %s309_s14, 32  ;;  %s419_s4 = scalar_lea.vmem %s309_s14, 128 }
 0x2a7   :  { %p416_p0 = scmp.ne.s32.totalorder %s309_s14, %s415_s15  ;;  %p420_p1 = scmp.lt.s32.totalorder %s309_s14, %s309_s14 }
 0x2a8   :  { %p421_p2 = scmp.lt.s32.totalorder %s419_s4, %s415_s15 }
 0x2aa   :  { %p422_p3 = por %p421_p2, %p420_p1 }
 0x2ac   :  { %p423_p4 = pnand %p422_p3, %p416_p0 }
 0x2ae   :  { %426 = shalt.err (!%p423_p4)
}
 0x2af   :  { %s427_s6 = scalar_lea.hbm %s571_s7, 32 }
 0x2b0   :  { %p428_p5 = scmp.ne.s32.totalorder %s571_s7, %s427_s6  ;;  %p431_p6 = scmp.lt.u32.totalorder %s427_s6, %s571_s7 }
 0x2b2   :  { %p433_p7 = pnand %p431_p6, %p428_p5 }
 0x2b4   :  { %436 = shalt.err (!%p433_p7)
}
 0x2b5   :  { %s443_s22 = smov 32   ;;  %s444_s23 = smov 2  }
 0x2b6   :  { %314 = dma.vmem_to_hbm [thread:$0]  %s309_s14, 32, %s571_s7, [#allocation4], %s443_s22, %s443_s22, %s444_s23  }
 0x2b7   :  { %437 = dma.done.wait [#allocation4], 128  }
 0x2b8   :  { %438 = vsyncadd [#allocation4], 4294967168 }
 0x2b9   :  { %318 = vsyncpa [#allocation4], 1 }

</bundles_post_ra>
